<compile_context>
chip_gen: v7x
topology: tpu7x:2x2x1
jax: 0.10.0
libtpu: 0.0.40
codegen_flags: <defaults>
</compile_context>

<pallas_src>
import jax
import jax.numpy as jnp
from jax import lax
from jax.experimental import pallas as pl
from jax.experimental.pallas import tpu as pltpu

_LANES = 128
_SUBLANES = 8


def _round_up(x, m):
    return -(-x // m) * m


def _sigmoid(x):
    # sigmoid(x) == 0.5 * tanh(0.5 * x) + 0.5  (single EUP transcendental).
    return 0.5 * jnp.tanh(0.5 * x) + 0.5


def _valid_mask(shape, row_offset, n_valid):
    """Mask of elements whose flat index (row-major over (rows,128)) < n_valid.

    Avoids building flat element indices (no int32 overflow risk for large n):
    compares global row index against n//128 and, only if needed, the lane
    index of the single partial row.
    """
    full_rows = n_valid // _LANES          # python int, baked into the kernel
    rem = n_valid % _LANES                 # python int
    row = lax.broadcasted_iota(jnp.int32, shape, 0) + row_offset
    valid = row < full_rows
    if rem:
        lane = lax.broadcasted_iota(jnp.int32, shape, 1)
        valid = valid | ((row == full_rows) & (lane < rem))
    return valid


# ----------------------------- Pallas kernels ------------------------------ #
def _make_single_block_kernel(n_valid, needs_mask):
    """Whole slab in one invocation: sigmoid + the three global reductions."""

    def kernel(pred_ref, tgt_ref, out_ref):
        p = _sigmoid(pred_ref[...].astype(jnp.float32))
        t = tgt_ref[...].astype(jnp.float32)
        if needs_mask:
            valid = _valid_mask(p.shape, 0, n_valid)
            p = jnp.where(valid, p, 0.0)
            t = jnp.where(valid, t, 0.0)
        out_ref[0] = jnp.sum(p * t)
        out_ref[1] = jnp.sum(p)
        out_ref[2] = jnp.sum(t)

    return kernel


def _make_tiled_kernel(n_valid, block_rows, needs_mask):
    """Streaming path: accumulate in (8,128) VMEM vregs; reduce once at end."""

    def kernel(pred_ref, tgt_ref, out_ref, inter_acc, p_acc, t_acc):
        i = pl.program_id(0)

        @pl.when(i == 0)
        def _():
            inter_acc[...] = jnp.zeros_like(inter_acc)
            p_acc[...] = jnp.zeros_like(p_acc)
            t_acc[...] = jnp.zeros_like(t_acc)

        p = _sigmoid(pred_ref[...].astype(jnp.float32))
        t = tgt_ref[...].astype(jnp.float32)

        if needs_mask:
            # Ragged last block / lane pad: zero out everything past element n.
            # (Edge-block contents beyond the array are undefined on TPU, so
            # masking -- not zero-fill assumptions -- is mandatory here.)
            valid = _valid_mask((block_rows, _LANES), i * block_rows, n_valid)
            p = jnp.where(valid, p, 0.0)
            t = jnp.where(valid, t, 0.0)

        # (block_rows, 128) -> (block_rows//8, 8, 128); summing the leading
        # axis is plain vreg-wise VPU adds (no XLU), hidden under the DMA.
        pr = p.reshape(-1, _SUBLANES, _LANES)
        tr = t.reshape(-1, _SUBLANES, _LANES)
        inter_acc[...] += jnp.sum(pr * tr, axis=0)
        p_acc[...] += jnp.sum(pr, axis=0)
        t_acc[...] += jnp.sum(tr, axis=0)

        @pl.when(i == pl.num_programs(0) - 1)
        def _():
            # Pay the cross-lane/sublane reduction exactly once.
            out_ref[0] = jnp.sum(inter_acc[...])
            out_ref[1] = jnp.sum(p_acc[...])
            out_ref[2] = jnp.sum(t_acc[...])

    return kernel


# -------------------------------- Wrapper ----------------------------------- #
def dice_loss(pred, target, *, tile_rows=2048, single_block_rows=256):
    """DiceLoss.forward(pred, target) with the reductions in a Pallas kernel."""
    n = pred.size
    assert target.size == n

    # Flatten in native dtype; cast happens inside the kernel so the HBM->VMEM
    # stream stays as narrow as the caller's dtype (bf16/int8 masks welcome).
    pred_f = pred.reshape(-1)
    tgt_f = target.reshape(-1)

    rows = -(-n // _LANES)               # rows of the lane-dense (rows,128) slab
    lane_pad = rows * _LANES - n         # elements short of a full last row

    if lane_pad:
        # n not lane-aligned: pad only to the next multiple of 128 (exactness
        # is restored by the in-kernel mask, not by a psum correction).
        pred_f = jnp.pad(pred_f, (0, lane_pad))
        tgt_f = jnp.pad(tgt_f, (0, lane_pad))

    pred2d = pred_f.reshape(rows, _LANES)
    tgt2d = tgt_f.reshape(rows, _LANES)

    out_shape = jax.ShapeDtypeStruct((3,), jnp.float32)
    smem_spec = pl.BlockSpec(memory_space=pltpu.MemorySpace.SMEM)

    if rows <= single_block_rows:
        # Small slab: one invocation, no grid, no pipelining needed.
        sums = pl.pallas_call(
            _make_single_block_kernel(n, lane_pad != 0),
            out_shape=out_shape,
            in_specs=[
                pl.BlockSpec(memory_space=pltpu.MemorySpace.VMEM),
                pl.BlockSpec(memory_space=pltpu.MemorySpace.VMEM),
            ],
            out_specs=smem_spec,
        )(pred2d, tgt2d)
    else:
        # Streaming path: at least 2 tiles so the pipeline overlaps DMA with
        # compute; cap at tile_rows (2048 rows = 1 MiB f32 per buffer ->
        # ~4 MiB double-buffered across both inputs, well inside the default
        # scoped-VMEM limit on v5e/v6e/v7x).
        block_rows = min(tile_rows, _round_up(-(-rows // 2), _SUBLANES))
        num_tiles = -(-rows // block_rows)
        needs_mask = num_tiles * block_rows * _LANES != n

        sums = pl.pallas_call(
            _make_tiled_kernel(n, block_rows, needs_mask),
            out_shape=out_shape,
            grid_spec=pltpu.PrefetchScalarGridSpec(
                num_scalar_prefetch=0,
                grid=(num_tiles,),
                in_specs=[
                    pl.BlockSpec((block_rows, _LANES), lambda i: (i, 0)),
                    pl.BlockSpec((block_rows, _LANES), lambda i: (i, 0)),
                ],
                out_specs=smem_spec,
                scratch_shapes=[pltpu.VMEM((_SUBLANES, _LANES), jnp.float32)] * 3,
            ),
            compiler_params=pltpu.CompilerParams(
                dimension_semantics=("arbitrary",)),
        )(pred2d, tgt2d)

    smooth = jnp.float32(1.0)
    inter, psum, tsum = sums[0], sums[1], sums[2]
    return 1.0 - (2.0 * inter + smooth) / (psum + tsum + smooth)


# --------------------------- Pure-JAX reference ----------------------------- #
def dice_loss_ref(pred, target):
    p = jax.nn.sigmoid(pred.reshape(-1).astype(jnp.float32))
    t = target.reshape(-1).astype(jnp.float32)
    smooth = 1.0
    inter = jnp.sum(p * t)
    return 1.0 - (2.0 * inter + smooth) / (jnp.sum(p) + jnp.sum(t) + smooth)


if __name__ == "__main__":
    key = jax.random.PRNGKey(0)
    k1, k2, k3, k4, k5, k6, k7, k8 = jax.random.split(key, 8)

    # Primary case: NCHW logits/mask pair like the PyTorch conv outputs.
    # 2048 elements -> (16,128) slab, single-invocation kernel, no mask/pad.
    pred = jax.random.normal(k1, (2, 4, 16, 16), dtype=jnp.float32)
    target = (jax.random.uniform(k2, (2, 4, 16, 16)) > 0.5).astype(jnp.float32)
    loss = jax.block_until_ready(dice_loss(pred, target))
    ref = jax.block_until_ready(dice_loss_ref(pred, target))
    assert jnp.allclose(loss, ref, atol=1e-5, rtol=1e-4), (loss, ref)

    # Lane-misaligned size (15000 elems): small lane pad + in-kernel mask,
    # single-block path.
    pred_p = jax.random.normal(k3, (2, 3, 50, 50), dtype=jnp.float32)
    target_p = (jax.random.uniform(k4, (2, 3, 50, 50)) > 0.5).astype(jnp.float32)
    loss_p = jax.block_until_ready(dice_loss(pred_p, target_p))
    ref_p = jax.block_until_ready(dice_loss_ref(pred_p, target_p))
    assert jnp.allclose(loss_p, ref_p, atol=1e-5, rtol=1e-4), (loss_p, ref_p)

    # Larger aligned case (131072 elems): tiled streaming path, 2 grid steps,
    # no pad, no mask.
    pred_l = jax.random.normal(k5, (2, 4, 128, 128), dtype=jnp.float32)
    target_l = (jax.random.uniform(k6, (2, 4, 128, 128)) > 0.5).astype(jnp.float32)
    loss_l = jax.block_until_ready(dice_loss(pred_l, target_l))
    ref_l = jax.block_until_ready(dice_loss_ref(pred_l, target_l))
    assert jnp.allclose(loss_l, ref_l, atol=1e-5, rtol=1e-4), (loss_l, ref_l)

    # Misaligned tiled case (60000 elems) with a native bf16 mask: exercises
    # ragged last block + in-kernel masking + narrow target streaming.
    pred_r = jax.random.normal(k7, (2, 3, 100, 100), dtype=jnp.float32)
    target_r = (jax.random.uniform(k8, (2, 3, 100, 100)) > 0.5).astype(jnp.bfloat16)
    loss_r = jax.block_until_ready(dice_loss(pred_r, target_r))
    ref_r = jax.block_until_ready(dice_loss_ref(pred_r, target_r))
    assert jnp.allclose(loss_r, ref_r, atol=1e-5, rtol=1e-4), (loss_r, ref_r)

    print("KERNEL_OK")
</pallas_src>

<mosaic_0001>
module attributes {stable_mosaic.version = 11 : i64} {
  func.func @kernel(%arg0: memref<16x128xf32, #tpu.memory_space<vmem>>, %arg1: memref<16x128xf32, #tpu.memory_space<vmem>>, %arg2: memref<3xf32, #tpu.memory_space<smem>>) attributes {dimension_semantics = [], scalar_prefetch = 0 : i64, scratch_operands = 0 : i64, tpu.core_type = #tpu.core_type<tc>} {
    %c0 = arith.constant 0 : index
    %c0_0 = arith.constant 0 : index
    %0 = vector.load %arg0[%c0, %c0_0] : memref<16x128xf32, #tpu.memory_space<vmem>>, vector<16x128xf32>
    %cst = arith.constant 5.000000e-01 : f32
    %1 = vector.broadcast %cst : f32 to vector<16x128xf32>
    %2 = arith.mulf %1, %0 : vector<16x128xf32>
    %3 = math.tanh %2 : vector<16x128xf32>
    %cst_1 = arith.constant 5.000000e-01 : f32
    %4 = vector.broadcast %cst_1 : f32 to vector<16x128xf32>
    %5 = arith.mulf %4, %3 : vector<16x128xf32>
    %cst_2 = arith.constant 5.000000e-01 : f32
    %6 = vector.broadcast %cst_2 : f32 to vector<16x128xf32>
    %7 = arith.addf %5, %6 : vector<16x128xf32>
    %c0_3 = arith.constant 0 : index
    %c0_4 = arith.constant 0 : index
    %8 = vector.load %arg1[%c0_3, %c0_4] : memref<16x128xf32, #tpu.memory_space<vmem>>, vector<16x128xf32>
    %9 = arith.mulf %7, %8 : vector<16x128xf32>
    %10 = vector.shape_cast %9 : vector<16x128xf32> to vector<1x16x128xf32>
    %cst_5 = arith.constant dense<0.000000e+00> : vector<1xf32>
    %11 = vector.multi_reduction <add>, %10, %cst_5 [1, 2] : vector<1x16x128xf32> to vector<1xf32>
    %12 = vector.shape_cast %11 : vector<1xf32> to vector<1x1x1xf32>
    %13 = vector.extract %12[0, 0, 0] : f32 from vector<1x1x1xf32>
    %c0_6 = arith.constant 0 : index
    %14 = memref.load %arg2[%c0_6] : memref<3xf32, #tpu.memory_space<smem>>
    memref.store %13, %arg2[%c0_6] : memref<3xf32, #tpu.memory_space<smem>>
    %15 = vector.shape_cast %7 : vector<16x128xf32> to vector<1x16x128xf32>
    %cst_7 = arith.constant dense<0.000000e+00> : vector<1xf32>
    %16 = vector.multi_reduction <add>, %15, %cst_7 [1, 2] : vector<1x16x128xf32> to vector<1xf32>
    %17 = vector.shape_cast %16 : vector<1xf32> to vector<1x1x1xf32>
    %18 = vector.extract %17[0, 0, 0] : f32 from vector<1x1x1xf32>
    %c1 = arith.constant 1 : index
    %19 = memref.load %arg2[%c1] : memref<3xf32, #tpu.memory_space<smem>>
    memref.store %18, %arg2[%c1] : memref<3xf32, #tpu.memory_space<smem>>
    %20 = vector.shape_cast %8 : vector<16x128xf32> to vector<1x16x128xf32>
    %cst_8 = arith.constant dense<0.000000e+00> : vector<1xf32>
    %21 = vector.multi_reduction <add>, %20, %cst_8 [1, 2] : vector<1x16x128xf32> to vector<1xf32>
    %22 = vector.shape_cast %21 : vector<1xf32> to vector<1x1x1xf32>
    %23 = vector.extract %22[0, 0, 0] : f32 from vector<1x1x1xf32>
    %c2 = arith.constant 2 : index
    %24 = memref.load %arg2[%c2] : memref<3xf32, #tpu.memory_space<smem>>
    memref.store %23, %arg2[%c2] : memref<3xf32, #tpu.memory_space<smem>>
    return
  }
}

</mosaic_0001>

<bundles_post_ra>
// kernel: tpu_custom_call.1
= control target key start
LH: loop header
LB: loop body
LE: loop exit
PB: predicated region body
PF: predicated region fallthrough
CT: control target
= control target key end

     0   :  { %7 = vsyncpa [#allocation3], 0  ;;  %s236_s0 = inlined_call_operand.hbm [shape: f32[16,128], index: 0, kind: input, shape index: {}]   ;;  %s237_s1 = inlined_call_operand.hbm [shape: f32[16,128], index: 1, kind: input, shape index: {}]   ;;  %s238_s2 = inlined_call_operand.hbm [shape: f32[3], index: 2, kind: output, shape index: {}]  }
   0x1   :  { %8 = vsyncpa [#allocation6], 0 }
   0x2   :  { %9 = vsyncpa [#allocation4], 0  ;;  %s180_s9 = smov [#allocation2]   ;;  %s120_s13 = scalar_lea.hbm %s236_s0, 256 }
   0x3   :  { %s15_s10 = sshll.u32 %s180_s9, 4  ;;  %p121_p0 = scmp.ne.s32.totalorder %s236_s0, %s120_s13  ;;  %s16_s10 = int_to_ptr.vmem [resolvable:$true] %s15_s10 }
   0x4   :  { %p124_p1 = scmp.lt.u32.totalorder %s120_s13, %s236_s0 }
   0x6   :  { %p126_p2 = pnand %p124_p1, %p121_p0 }
   0x8   :  { %129 = shalt.err (!%p126_p2)
}
   0x9   :  { %s130_s18 = scalar_lea.vmem %s16_s10, 256  ;;  %p135_p4 = scmp.lt.s32.totalorder %s16_s10, %s16_s10 }
   0xa   :  { %p131_p3 = scmp.ne.s32.totalorder %s16_s10, %s130_s18  ;;  %p136_p5 = scmp.lt.s32.totalorder %s130_s18, %s130_s18 }
   0xc   :  { %p137_p6 = por %p136_p5, %p135_p4 }
   0xe   :  { %p138_p7 = pnand %p137_p6, %p131_p3 }
  0x10   :  { %141 = shalt.err (!%p138_p7)
}
  0x11   :  { %s181_s19 = smov 128   ;;  %s182_s20 = smov 8  }
  0x12   :  { %21 = dma.hbm_to_vmem [thread:$0]  %s236_s0, 256, %s16_s10, [#allocation3], %s181_s19, %s181_s19, %s182_s20  }
  0x13   :  { %s183_s23 = smov [#allocation5]   ;;  %s142_s27 = scalar_lea.hbm %s237_s1, 256 }
  0x14   :  { %s27_s24 = sshll.u32 %s183_s23, 4  ;;  %p143_p8 = scmp.ne.s32.totalorder %s237_s1, %s142_s27  ;;  %s28_s24 = int_to_ptr.vmem [resolvable:$true] %s27_s24 }
  0x15   :  { %p146_p9 = scmp.lt.u32.totalorder %s142_s27, %s237_s1 }
  0x17   :  { %p148_p10 = pnand %p146_p9, %p143_p8 }
  0x19   :  { %151 = shalt.err (!%p148_p10)
}
  0x1a   :  { %s152_s4 = scalar_lea.vmem %s28_s24, 256  ;;  %p157_p12 = scmp.lt.s32.totalorder %s28_s24, %s28_s24 }
  0x1b   :  { %p153_p11 = scmp.ne.s32.totalorder %s28_s24, %s152_s4  ;;  %p158_p13 = scmp.lt.s32.totalorder %s152_s4, %s152_s4 }
  0x1d   :  { %p159_p0 = por %p158_p13, %p157_p12 }
  0x1f   :  { %p160_p1 = pnand %p159_p0, %p153_p11 }
  0x21   :  { %163 = shalt.err (!%p160_p1)
}
  0x22   :  { %33 = dma.hbm_to_vmem [thread:$0]  %s237_s1, 256, %s28_s24, [#allocation6], %s181_s19, %s181_s19, %s182_s20  }
  0x23   :  { %174 = dma.done.wait [#allocation3], 256  }
  0x24   :  { %175 = vsyncadd [#allocation3], 4294967040 }
  0x25   :  { %176 = dma.done.wait [#allocation6], 256  }
  0x26   :  { %177 = vsyncadd [#allocation6], 4294967040  ;;  %v50_v0 = vld [vmem:[#allocation5] sm:$0xff]  ;;  %v51_v1 = vld [vmem:[#allocation5 + $0x8] sm:$0xff]  ;;  %s164_s10 = scalar_lea.hbm %s238_s2, 16 }
  0x27   :  { %v40_v2 = vld [vmem:[#allocation2] sm:$0xff]  ;;  %v78_v3 = vadd.f32 %v51_v1, %v50_v0  ;;  %v41_v4 = vld [vmem:[#allocation2 + $0x8] sm:$0xff]  ;;  %p165_p2 = scmp.ne.s32.totalorder %s238_s2, %s164_s10  ;;  %p168_p3 = scmp.lt.u32.totalorder %s164_s10, %s238_s2 }
  0x28   :  { %v42_v5 = vmul.f32 0.5, %v40_v2  ;;  %v43_v6 = vmul.f32 0.5, %v41_v4 }
  0x29   :  { %79 = vadd.xlane.f32.xlu1 %v78_v3  ;;  %p170_p4 = pnand %p168_p3, %p165_p2 }
  0x2a   :  { %116 = vtanh.f32 %v42_v5 }
  0x2b   :  { %118 = vtanh.f32 %v43_v6 }
  0x34   :  { %v117_v7 = vpop.eup %116 }
  0x35   :  { %v119_v8 = vpop.eup %118  ;;  %v46_v9 = vmul.f32 0.5, %v117_v7 }
  0x36   :  { %v47_v10 = vmul.f32 0.5, %v119_v8 }
  0x37   :  { %v48_v11 = vadd.f32 0.5, %v46_v9 }
  0x38   :  { %v49_v12 = vadd.f32 0.5, %v47_v10 }
  0x39   :  { %v52_v13 = vmul.f32 %v50_v0, %v48_v11 }
  0x3a   :  { %v53_v14 = vmul.f32 %v51_v1, %v49_v12  ;;  %v66_v16 = vadd.f32 %v49_v12, %v48_v11 }
  0x3c   :  { %v54_v15 = vadd.f32 %v53_v14, %v52_v13 }
  0x3e   :  { %55 = vadd.xlane.f32.xlu0 %v54_v15 }
  0x42   :  { %67 = vadd.xlane.f32.xlu0 %v66_v16 }
  0xb6   :  { %v80_v17 = vpop.xlane.xlu1 %79 }
  0xb7   :  { %v81_v18 = vrot.slane %v80_v17, 4 }
  0xb9   :  { %v82_v19 = vadd.f32 %v81_v18, %v80_v17 }
  0xbb   :  { %v83_v23 = vrot.slane %v82_v19, 2 }
  0xbd   :  { %v84_v29 = vadd.f32 %v83_v23, %v82_v19 }
  0xbf   :  { %v85_v34 = vrot.slane %v84_v29, 1 }
  0xc1   :  { %v86_v37 = vadd.f32 %v85_v34, %v84_v29 }
  0xcb   :  { %v56_v20 = vpop.xlane.xlu0 %55 }
  0xcc   :  { %v57_v21 = vrot.slane %v56_v20, 4 }
  0xce   :  { %v58_v22 = vadd.f32 %v57_v21, %v56_v20 }
  0xcf   :  { %v68_v24 = vpop.xlane.xlu0 %67 }
  0xd0   :  { %v59_v25 = vrot.slane %v58_v22, 2  ;;  %v69_v26 = vrot.slane %v68_v24, 4 }
  0xd2   :  { %v70_v27 = vadd.f32 %v69_v26, %v68_v24  ;;  %v60_v28 = vadd.f32 %v59_v25, %v58_v22 }
  0xd4   :  { %v71_v30 = vrot.slane %v70_v27, 2  ;;  %v61_v31 = vrot.slane %v60_v28, 1 }
  0xd6   :  { %v72_v32 = vadd.f32 %v71_v30, %v70_v27  ;;  %v62_v33 = vadd.f32 %v61_v31, %v60_v28 }
  0xd8   :  { %105 = vpush %v62_v33  ;;  %v73_v35 = vrot.slane %v72_v32, 1 }
  0xda   :  { %v74_v36 = vadd.f32 %v73_v35, %v72_v32 }
  0xdc   :  { %107 = vpush %v74_v36 }
  0xdd   :  { %109 = vpush %v86_v37 }
 0x109   :  { %s106_s1 = spop %105 }
 0x10a   :  { %65 = sst [smem:[#allocation7]] %s106_s1 }
 0x10d   :  { %s108_s6 = spop %107 }
 0x10e   :  { %77 = sst [smem:[#allocation7 + $0x1]] %s108_s6  ;;  %s110_s7 = spop %109 }
 0x10f   :  { %89 = sst [smem:[#allocation7 + $0x2]] %s110_s7 }
 0x110   :  { %173 = shalt.err (!%p170_p4)
}
 0x111   :  { %s184_s15 = smov [#allocation7]  }
 0x112   :  { %97 = dma.smem_to_hbm %s184_s15, 16, %s238_s2, [#allocation4]  }
 0x113   :  { %178 = dma.done.wait [#allocation4], 16  }
 0x114   :  { %179 = vsyncadd [#allocation4], 4294967280 }
 0x115   :  { %101 = sfence }
 0x116   :  { %102 = vsyncpa [#allocation3], 1 }
 0x117   :  { %103 = vsyncpa [#allocation6], 1 }
 0x118   :  { %104 = vsyncpa [#allocation4], 1 }

</bundles_post_ra>
